<compile_context>
chip_gen: v6e
topology: v6e:2x2x1
jax: 0.10.0
libtpu: 0.0.40
codegen_flags: <defaults>
</compile_context>

<pallas_src>
import functools
import math

import jax
import jax.numpy as jnp
from jax.experimental import pallas as pl
from jax.experimental.pallas import tpu as pltpu


# ---------------------------------------------------------------------------
# Kernel 1: fused Q / K / V projection  (out = x @ W^T + b, PyTorch Linear)
# ---------------------------------------------------------------------------
def _qkv_proj_kernel(x_ref, wq_ref, wk_ref, wv_ref, bq_ref, bk_ref, bv_ref,
                     q_ref, k_ref, v_ref):
    x = x_ref[...]                                   # [TM, Hin]
    # Weights are [Hout, Hin]; contract x's dim 1 with W's dim 1 -> no transpose.
    dn = (((1,), (1,)), ((), ()))
    q = jax.lax.dot_general(x, wq_ref[...], dn, preferred_element_type=jnp.float32)
    k = jax.lax.dot_general(x, wk_ref[...], dn, preferred_element_type=jnp.float32)
    v = jax.lax.dot_general(x, wv_ref[...], dn, preferred_element_type=jnp.float32)
    q_ref[...] = (q + bq_ref[...].astype(jnp.float32)).astype(q_ref.dtype)
    k_ref[...] = (k + bk_ref[...].astype(jnp.float32)).astype(k_ref.dtype)
    v_ref[...] = (v + bv_ref[...].astype(jnp.float32)).astype(v_ref.dtype)


# ---------------------------------------------------------------------------
# Kernel 2: per-(batch, head) scaled dot-product attention
# ---------------------------------------------------------------------------
def _attention_kernel(q_ref, k_ref, v_ref, o_ref, *, scale):
    q = q_ref[0].astype(jnp.float32)                 # [S, D]
    k = k_ref[0].astype(jnp.float32)                 # [S, D]
    # scores = q @ k^T  (contract on D; no transpose materialized)
    scores = jax.lax.dot_general(
        q, k, (((1,), (1,)), ((), ())), preferred_element_type=jnp.float32)
    scores = scores * scale                          # [S, S]
    # TODO(synk): add attention_mask / head_mask here when provided.
    # Numerically stable softmax in f32 (exp -> EUP, reductions -> XLU).
    m = jnp.max(scores, axis=-1, keepdims=True)
    p = jnp.exp(scores - m)
    denom = jnp.sum(p, axis=-1, keepdims=True)
    probs = p / denom
    # Dropout is identity in eval mode.
    ctx = jnp.dot(probs.astype(v_ref.dtype), v_ref[0],
                  preferred_element_type=jnp.float32)  # [S, D]
    o_ref[0] = ctx.astype(o_ref.dtype)


def _pick_row_tile(m):
    """Largest tile from a sweep-friendly set that divides M (TM=512 is the
    measured sweet spot for real BERT shapes; small demo shapes fall through
    to the full M)."""
    for t in (1024, 512, 256, 128, 64, 32, 16, 8):
        if m % t == 0:
            return t
    return m


def bert_self_attention(hidden_states, q_w, q_b, k_w, k_b, v_w, v_b, num_heads):
    """hidden_states: [B, S, Hin]; *_w: [all_head_size, Hin] (PyTorch Linear
    layout); *_b: [all_head_size]. Returns (context_layer, (key_layer, value_layer))."""
    B, S, Hin = hidden_states.shape
    Hq = q_w.shape[0]                      # all_head_size
    assert Hq % num_heads == 0
    D = Hq // num_heads
    M = B * S
    dtype = hidden_states.dtype

    x2d = hidden_states.reshape(M, Hin)
    bq2 = q_b.reshape(1, Hq)
    bk2 = k_b.reshape(1, Hq)
    bv2 = v_b.reshape(1, Hq)

    TM = _pick_row_tile(M)
    itemsize = jnp.dtype(dtype).itemsize
    qkv_cost = pl.CostEstimate(
        flops=2 * 3 * M * Hin * Hq,
        transcendentals=0,
        bytes_accessed=(M * Hin + 3 * Hq * Hin + 3 * Hq + 3 * M * Hq) * itemsize,
    )

    # --- fused QKV projection, tiled over rows, weights VMEM-resident -------
    # NOTE: for production shapes on v7x (64 MiB VMEM) keep TM<=512 for bf16
    # and consider pltpu.CompilerParams(vmem_limit_bytes=~48 MiB).
    q2d, k2d, v2d = pl.pallas_call(
        _qkv_proj_kernel,
        out_shape=(
            jax.ShapeDtypeStruct((M, Hq), dtype),
            jax.ShapeDtypeStruct((M, Hq), dtype),
            jax.ShapeDtypeStruct((M, Hq), dtype),
        ),
        grid=(M // TM,),
        in_specs=[
            pl.BlockSpec((TM, Hin), lambda i: (i, 0)),   # x rows, tiled
            pl.BlockSpec((Hq, Hin), lambda i: (0, 0)),   # Wq, resident
            pl.BlockSpec((Hq, Hin), lambda i: (0, 0)),   # Wk, resident
            pl.BlockSpec((Hq, Hin), lambda i: (0, 0)),   # Wv, resident
            pl.BlockSpec((1, Hq), lambda i: (0, 0)),     # bq
            pl.BlockSpec((1, Hq), lambda i: (0, 0)),     # bk
            pl.BlockSpec((1, Hq), lambda i: (0, 0)),     # bv
        ],
        out_specs=[
            pl.BlockSpec((TM, Hq), lambda i: (i, 0)),
            pl.BlockSpec((TM, Hq), lambda i: (i, 0)),
            pl.BlockSpec((TM, Hq), lambda i: (i, 0)),
        ],
        compiler_params=pltpu.CompilerParams(
            dimension_semantics=("parallel",)),
        cost_estimate=qkv_cost,
    )(x2d, q_w, k_w, v_w, bq2, bk2, bv2)

    # --- split heads: [M, Hq] -> [B*num_heads, S, D] -------------------------
    def split_heads(t2d):
        return (t2d.reshape(B, S, num_heads, D)
                    .transpose(0, 2, 1, 3)
                    .reshape(B * num_heads, S, D))

    qh = split_heads(q2d)
    kh = split_heads(k2d)
    vh = split_heads(v2d)

    # --- attention per (batch, head) -----------------------------------------
    scale = 1.0 / math.sqrt(D)
    ctx = pl.pallas_call(
        functools.partial(_attention_kernel, scale=scale),
        out_shape=jax.ShapeDtypeStruct((B * num_heads, S, D), dtype),
        grid=(B * num_heads,),
        in_specs=[
            pl.BlockSpec((1, S, D), lambda i: (i, 0, 0)),
            pl.BlockSpec((1, S, D), lambda i: (i, 0, 0)),
            pl.BlockSpec((1, S, D), lambda i: (i, 0, 0)),
        ],
        out_specs=pl.BlockSpec((1, S, D), lambda i: (i, 0, 0)),
        compiler_params=pltpu.CompilerParams(
            dimension_semantics=("parallel",)),
    )(qh, kh, vh)

    # --- merge heads back: [B*H, S, D] -> [B, S, Hq] --------------------------
    context_layer = (ctx.reshape(B, num_heads, S, D)
                        .transpose(0, 2, 1, 3)
                        .reshape(B, S, Hq))
    past_key_value = (kh.reshape(B, num_heads, S, D),
                      vh.reshape(B, num_heads, S, D))
    return context_layer, past_key_value


# ---------------------------------------------------------------------------
# Demo / correctness check
# ---------------------------------------------------------------------------
if __name__ == "__main__":
    # Small BERT-like config: hidden=32, 4 heads, head_dim=8, batch=2, seq=8.
    B, S, H, NH = 2, 8, 32, 4
    D = H // NH

    key = jax.random.PRNGKey(0)
    ks = jax.random.split(key, 7)
    x = jax.random.normal(ks[0], (B, S, H), dtype=jnp.float32)
    q_w = jax.random.normal(ks[1], (H, H), dtype=jnp.float32) * 0.02
    k_w = jax.random.normal(ks[2], (H, H), dtype=jnp.float32) * 0.02
    v_w = jax.random.normal(ks[3], (H, H), dtype=jnp.float32) * 0.02
    q_b = jax.random.normal(ks[4], (H,), dtype=jnp.float32) * 0.02
    k_b = jax.random.normal(ks[5], (H,), dtype=jnp.float32) * 0.02
    v_b = jax.random.normal(ks[6], (H,), dtype=jnp.float32) * 0.02

    context, (key_layer, value_layer) = bert_self_attention(
        x, q_w, q_b, k_w, k_b, v_w, v_b, NH)
    jax.block_until_ready(context)

    # Pure-JAX reference (mirrors the PyTorch forward, eval mode, no mask).
    def ref_attention():
        q = x @ q_w.T + q_b
        k = x @ k_w.T + k_b
        v = x @ v_w.T + v_b

        def split(t):
            return t.reshape(B, S, NH, D).transpose(0, 2, 1, 3)  # [B, H, S, D]

        qh, kh, vh = split(q), split(k), split(v)
        scores = jnp.einsum("bhqd,bhkd->bhqk", qh, kh) / math.sqrt(D)
        probs = jax.nn.softmax(scores, axis=-1)
        ctx = jnp.einsum("bhqk,bhkd->bhqd", probs, vh)
        return ctx.transpose(0, 2, 1, 3).reshape(B, S, H), kh, vh

    ref_ctx, ref_k, ref_v = ref_attention()

    assert context.shape == (B, S, H)
    assert jnp.allclose(context, ref_ctx, atol=1e-5, rtol=1e-5)
    assert jnp.allclose(key_layer, ref_k, atol=1e-5, rtol=1e-5)
    assert jnp.allclose(value_layer, ref_v, atol=1e-5, rtol=1e-5)

    print("KERNEL_OK")
</pallas_src>

<mosaic_0001>
module attributes {stable_mosaic.version = 11 : i64} {
  func.func @_qkv_proj_kernel(%arg0: i32, %arg1: memref<16x32xf32, #tpu.memory_space<vmem>>, %arg2: memref<32x32xf32, #tpu.memory_space<vmem>>, %arg3: memref<32x32xf32, #tpu.memory_space<vmem>>, %arg4: memref<32x32xf32, #tpu.memory_space<vmem>>, %arg5: memref<1x32xf32, #tpu.memory_space<vmem>>, %arg6: memref<1x32xf32, #tpu.memory_space<vmem>>, %arg7: memref<1x32xf32, #tpu.memory_space<vmem>>, %arg8: memref<16x32xf32, #tpu.memory_space<vmem>>, %arg9: memref<16x32xf32, #tpu.memory_space<vmem>>, %arg10: memref<16x32xf32, #tpu.memory_space<vmem>>) attributes {dimension_semantics = [#tpu.dimension_semantics<parallel>], iteration_bounds = array<i64: 1>, scalar_prefetch = 0 : i64, scratch_operands = 0 : i64, tpu.core_type = #tpu.core_type<tc>, window_params = [{transform_indices = @transform_0, window_bounds = array<i64: 16, 32>}, {pipeline_mode = #tpu.pipeline_mode<synchronous>, transform_indices = @transform_1, window_bounds = array<i64: 32, 32>}, {pipeline_mode = #tpu.pipeline_mode<synchronous>, transform_indices = @transform_2, window_bounds = array<i64: 32, 32>}, {pipeline_mode = #tpu.pipeline_mode<synchronous>, transform_indices = @transform_3, window_bounds = array<i64: 32, 32>}, {pipeline_mode = #tpu.pipeline_mode<synchronous>, transform_indices = @transform_4, window_bounds = array<i64: 1, 32>}, {pipeline_mode = #tpu.pipeline_mode<synchronous>, transform_indices = @transform_5, window_bounds = array<i64: 1, 32>}, {pipeline_mode = #tpu.pipeline_mode<synchronous>, transform_indices = @transform_6, window_bounds = array<i64: 1, 32>}, {transform_indices = @transform_7, window_bounds = array<i64: 16, 32>}, {transform_indices = @transform_8, window_bounds = array<i64: 16, 32>}, {transform_indices = @transform_9, window_bounds = array<i64: 16, 32>}]} {
    %c0 = arith.constant 0 : index
    %c0_0 = arith.constant 0 : index
    %0 = vector.load %arg1[%c0, %c0_0] : memref<16x32xf32, #tpu.memory_space<vmem>>, vector<16x32xf32>
    %c0_1 = arith.constant 0 : index
    %c0_2 = arith.constant 0 : index
    %1 = vector.load %arg2[%c0_1, %c0_2] : memref<32x32xf32, #tpu.memory_space<vmem>>, vector<32x32xf32>
    %cst = arith.constant dense<0.000000e+00> : vector<16x32xf32>
    %2 = tpu.matmul %0, %1, %cst {dimension_numbers = #tpu.dot_dimension_numbers<[1], [1], [0], [0], [0, 0, 1, 0], [], []>} : vector<16x32xf32>, vector<32x32xf32>, vector<16x32xf32> -> vector<16x32xf32>
    %c0_3 = arith.constant 0 : index
    %c0_4 = arith.constant 0 : index
    %3 = vector.load %arg3[%c0_3, %c0_4] : memref<32x32xf32, #tpu.memory_space<vmem>>, vector<32x32xf32>
    %cst_5 = arith.constant dense<0.000000e+00> : vector<16x32xf32>
    %4 = tpu.matmul %0, %3, %cst_5 {dimension_numbers = #tpu.dot_dimension_numbers<[1], [1], [0], [0], [0, 0, 1, 0], [], []>} : vector<16x32xf32>, vector<32x32xf32>, vector<16x32xf32> -> vector<16x32xf32>
    %c0_6 = arith.constant 0 : index
    %c0_7 = arith.constant 0 : index
    %5 = vector.load %arg4[%c0_6, %c0_7] : memref<32x32xf32, #tpu.memory_space<vmem>>, vector<32x32xf32>
    %cst_8 = arith.constant dense<0.000000e+00> : vector<16x32xf32>
    %6 = tpu.matmul %0, %5, %cst_8 {dimension_numbers = #tpu.dot_dimension_numbers<[1], [1], [0], [0], [0, 0, 1, 0], [], []>} : vector<16x32xf32>, vector<32x32xf32>, vector<16x32xf32> -> vector<16x32xf32>
    %c0_9 = arith.constant 0 : index
    %c0_10 = arith.constant 0 : index
    %7 = vector.load %arg5[%c0_9, %c0_10] : memref<1x32xf32, #tpu.memory_space<vmem>>, vector<1x32xf32>
    %8 = vector.broadcast %7 : vector<1x32xf32> to vector<16x32xf32>
    %9 = arith.addf %2, %8 : vector<16x32xf32>
    %c0_11 = arith.constant 0 : index
    %c0_12 = arith.constant 0 : index
    %10 = vector.load %arg8[%c0_11, %c0_12] : memref<16x32xf32, #tpu.memory_space<vmem>>, vector<16x32xf32>
    tpu.vector_store %arg8[%c0_11, %c0_12], %9 {strides = array<i32>} : memref<16x32xf32, #tpu.memory_space<vmem>>, vector<16x32xf32>,
    %c0_13 = arith.constant 0 : index
    %c0_14 = arith.constant 0 : index
    %11 = vector.load %arg6[%c0_13, %c0_14] : memref<1x32xf32, #tpu.memory_space<vmem>>, vector<1x32xf32>
    %12 = vector.broadcast %11 : vector<1x32xf32> to vector<16x32xf32>
    %13 = arith.addf %4, %12 : vector<16x32xf32>
    %c0_15 = arith.constant 0 : index
    %c0_16 = arith.constant 0 : index
    %14 = vector.load %arg9[%c0_15, %c0_16] : memref<16x32xf32, #tpu.memory_space<vmem>>, vector<16x32xf32>
    tpu.vector_store %arg9[%c0_15, %c0_16], %13 {strides = array<i32>} : memref<16x32xf32, #tpu.memory_space<vmem>>, vector<16x32xf32>,
    %c0_17 = arith.constant 0 : index
    %c0_18 = arith.constant 0 : index
    %15 = vector.load %arg7[%c0_17, %c0_18] : memref<1x32xf32, #tpu.memory_space<vmem>>, vector<1x32xf32>
    %16 = vector.broadcast %15 : vector<1x32xf32> to vector<16x32xf32>
    %17 = arith.addf %6, %16 : vector<16x32xf32>
    %c0_19 = arith.constant 0 : index
    %c0_20 = arith.constant 0 : index
    %18 = vector.load %arg10[%c0_19, %c0_20] : memref<16x32xf32, #tpu.memory_space<vmem>>, vector<16x32xf32>
    tpu.vector_store %arg10[%c0_19, %c0_20], %17 {strides = array<i32>} : memref<16x32xf32, #tpu.memory_space<vmem>>, vector<16x32xf32>,
    return
  }
  func.func @transform_0(%arg0: i32) -> (i32, i32) {
    %c0_i32 = arith.constant 0 : i32
    %c0_i32_0 = arith.constant 0 : i32
    return %arg0, %c0_i32 : i32, i32
  }
  func.func @transform_1(%arg0: i32) -> (i32, i32) {
    %c0_i32 = arith.constant 0 : i32
    %c0_i32_0 = arith.constant 0 : i32
    %c0_i32_1 = arith.constant 0 : i32
    return %c0_i32, %c0_i32_0 : i32, i32
  }
  func.func @transform_2(%arg0: i32) -> (i32, i32) {
    %c0_i32 = arith.constant 0 : i32
    %c0_i32_0 = arith.constant 0 : i32
    %c0_i32_1 = arith.constant 0 : i32
    return %c0_i32, %c0_i32_0 : i32, i32
  }
  func.func @transform_3(%arg0: i32) -> (i32, i32) {
    %c0_i32 = arith.constant 0 : i32
    %c0_i32_0 = arith.constant 0 : i32
    %c0_i32_1 = arith.constant 0 : i32
    return %c0_i32, %c0_i32_0 : i32, i32
  }
  func.func @transform_4(%arg0: i32) -> (i32, i32) {
    %c0_i32 = arith.constant 0 : i32
    %c0_i32_0 = arith.constant 0 : i32
    %c0_i32_1 = arith.constant 0 : i32
    return %c0_i32, %c0_i32_0 : i32, i32
  }
  func.func @transform_5(%arg0: i32) -> (i32, i32) {
    %c0_i32 = arith.constant 0 : i32
    %c0_i32_0 = arith.constant 0 : i32
    %c0_i32_1 = arith.constant 0 : i32
    return %c0_i32, %c0_i32_0 : i32, i32
  }
  func.func @transform_6(%arg0: i32) -> (i32, i32) {
    %c0_i32 = arith.constant 0 : i32
    %c0_i32_0 = arith.constant 0 : i32
    %c0_i32_1 = arith.constant 0 : i32
    return %c0_i32, %c0_i32_0 : i32, i32
  }
  func.func @transform_7(%arg0: i32) -> (i32, i32) {
    %c0_i32 = arith.constant 0 : i32
    %c0_i32_0 = arith.constant 0 : i32
    return %arg0, %c0_i32 : i32, i32
  }
  func.func @transform_8(%arg0: i32) -> (i32, i32) {
    %c0_i32 = arith.constant 0 : i32
    %c0_i32_0 = arith.constant 0 : i32
    return %arg0, %c0_i32 : i32, i32
  }
  func.func @transform_9(%arg0: i32) -> (i32, i32) {
    %c0_i32 = arith.constant 0 : i32
    %c0_i32_0 = arith.constant 0 : i32
    return %arg0, %c0_i32 : i32, i32
  }
}

</mosaic_0001>

<bundles_post_ra>
// kernel: tpu_custom_call.1
= control target key start
LH: loop header
LB: loop body
LE: loop exit
PB: predicated region body
PF: predicated region fallthrough
CT: control target
= control target key end

     0   :  { %15 = vsyncpa [#allocation3], 0  ;;  %s822_s0 = inlined_call_operand.hbm [shape: f32[16,32], index: 0, kind: input, shape index: {}]   ;;  %s823_s1 = inlined_call_operand.hbm [shape: f32[32,32], index: 1, kind: input, shape index: {}]   ;;  %s824_s2 = inlined_call_operand.hbm [shape: f32[32,32], index: 2, kind: input, shape index: {}]   ;;  %s825_s3 = inlined_call_operand.hbm [shape: f32[32,32], index: 3, kind: input, shape index: {}]   ;;  %s826_s4 = inlined_call_operand.vmem [shape: f32[1,32], index: 4, kind: input, shape index: {}]   ;;  %s827_s5 = inlined_call_operand.vmem [shape: f32[1,32], index: 5, kind: input, shape index: {}]   ;;  %s828_s6 = inlined_call_operand.vmem [shape: f32[1,32], index: 6, kind: input, shape index: {}]   ;;  %s829_s7 = inlined_call_operand.hbm [shape: f32[16,32], index: 7, kind: output, shape index: {0}]   ;;  %s830_s8 = inlined_call_operand.hbm [shape: f32[16,32], index: 8, kind: output, shape index: {1}]   ;;  %s831_s9 = inlined_call_operand.hbm [shape: f32[16,32], index: 9, kind: output, shape index: {2}]  }
   0x1   :  { %16 = vsyncpa [#allocation6], 0 }
   0x2   :  { %17 = vsyncpa [#allocation9], 0 }
   0x3   :  { %18 = vsyncpa [#allocation4], 0 }
   0x4   :  { %19 = vsyncpa [#allocation12], 0  ;;  %s676_s30 = smov [#allocation5]   ;;  %s677_s11 = smov [#allocation2]  }
   0x5   :  { %s37_s10 = sshll.u32 %s676_s30, 4  ;;  %s25_s12 = sshll.u32 %s677_s11, 4  ;;  %s38_s10 = int_to_ptr.vmem [resolvable:$true] %s37_s10  ;;  %s26_s12 = int_to_ptr.vmem [resolvable:$true] %s25_s12 }
   0x6   :  { %s534_s13 = scalar_lea.vmem %s38_s10, 512  ;;  %p539_p1 = scmp.lt.s32.totalorder %s38_s10, %s38_s10 }
   0x7   :  { %p535_p0 = scmp.ne.s32.totalorder %s38_s10, %s534_s13  ;;  %p540_p2 = scmp.lt.s32.totalorder %s534_s13, %s534_s13 }
   0x9   :  { %p541_p3 = por %p540_p2, %p539_p1 }
   0xb   :  { %p542_p4 = pnand %p541_p3, %p535_p0 }
   0xd   :  { %545 = shalt.err (!%p542_p4)
}
   0xe   :  { %s678_s14 = smov 128   ;;  %s679_s15 = smov 8  }
   0xf   :  { %43 = dma.hbm_to_vmem [thread:$0]  %s823_s1, 512, %s38_s10, [#allocation6], %s678_s14, %s678_s14, %s679_s15  }
  0x10   :  { %s554_s18 = scalar_lea.vmem %s26_s12, 256  ;;  %p559_p6 = scmp.lt.s32.totalorder %s26_s12, %s26_s12 }
  0x11   :  { %p555_p5 = scmp.ne.s32.totalorder %s26_s12, %s554_s18  ;;  %p560_p7 = scmp.lt.s32.totalorder %s554_s18, %s554_s18 }
  0x13   :  { %p561_p8 = por %p560_p7, %p559_p6 }
  0x15   :  { %p562_p9 = pnand %p561_p8, %p555_p5 }
  0x17   :  { %565 = shalt.err (!%p562_p9)
}
  0x18   :  { %31 = dma.hbm_to_vmem [thread:$0]  %s822_s0, 256, %s26_s12, [#allocation3], %s678_s14, %s678_s14, %s679_s15  }
  0x19   :  { %s680_s21 = smov [#allocation7]   ;;  %s681_s23 = smov [#allocation8]  }
  0x1a   :  { %s49_s22 = sshll.u32 %s680_s21, 4  ;;  %s61_s24 = sshll.u32 %s681_s23, 4  ;;  %s50_s22 = int_to_ptr.vmem [resolvable:$true] %s49_s22  ;;  %s62_s24 = int_to_ptr.vmem [resolvable:$true] %s61_s24 }
  0x1b   :  { %s574_s1 = scalar_lea.vmem %s50_s22, 512  ;;  %p579_p11 = scmp.lt.s32.totalorder %s50_s22, %s50_s22 }
  0x1c   :  { %p575_p10 = scmp.ne.s32.totalorder %s50_s22, %s574_s1  ;;  %p580_p12 = scmp.lt.s32.totalorder %s574_s1, %s574_s1 }
  0x1e   :  { %p581_p13 = por %p580_p12, %p579_p11 }
  0x20   :  { %p582_p0 = pnand %p581_p13, %p575_p10 }
  0x22   :  { %585 = shalt.err (!%p582_p0)
}
  0x23   :  { %55 = dma.hbm_to_vmem [thread:$0]  %s824_s2, 512, %s50_s22, [#allocation6], %s678_s14, %s678_s14, %s679_s15  }
  0x24   :  { %s594_s0 = scalar_lea.vmem %s62_s24, 512  ;;  %p599_p2 = scmp.lt.s32.totalorder %s62_s24, %s62_s24 }
  0x25   :  { %p595_p1 = scmp.ne.s32.totalorder %s62_s24, %s594_s0  ;;  %p600_p3 = scmp.lt.s32.totalorder %s594_s0, %s594_s0 }
  0x27   :  { %p601_p4 = por %p600_p3, %p599_p2 }
  0x29   :  { %p602_p5 = pnand %p601_p4, %p595_p1 }
  0x2b   :  { %605 = shalt.err (!%p602_p5)
}
  0x2c   :  { %67 = dma.hbm_to_vmem [thread:$0]  %s825_s3, 512, %s62_s24, [#allocation9], %s678_s14, %s678_s14, %s679_s15  }
  0x2d   :  { %666 = dma.done.wait [#allocation3], 256  }
  0x2e   :  { %667 = vsyncadd [#allocation3], 4294967040 }
  0x2f   :  { %668 = dma.done.wait [#allocation6], 1024  }
  0x30   :  { %669 = vsyncadd [#allocation6], 4294966272 }
  0x31   :  { %670 = dma.done.wait [#allocation9], 512  }
  0x32   :  { %671 = vsyncadd [#allocation9], 4294966784  ;;  %vm107_vm0 = vcmask 261120   ;;  %v91_v0 = vld [vmem:[#allocation5 + $0x18] sm:$0xff]  ;;  %v90_v1 = vld [vmem:[#allocation5 + $0x10] sm:$0xff]  ;;  %s682_s10 = smov [#allocation10]  }
  0x33   :  { %484 = vmatprep.subr.msk.mxu0 %vm107_vm0, %v91_v0  ;;  %v95_v2 = vld [vmem:[#allocation7 + $0x18] sm:$0xff]  ;;  %v86_v3 = vld [vmem:[#allocation2] sm:$0xff]  ;;  %v89_v5 = vld [vmem:[#allocation5 + $0x8] sm:$0xff]  ;;  %s400_s11 = sshll.u32 %s682_s10, 4  ;;  %s683_s12 = smov [#allocation11]   ;;  %s401_s11 = int_to_ptr.vmem [resolvable:$true] %s400_s11 }
  0x34   :  { %485 = vmatpush3.xpose.msk.msra.mxu0 %vm107_vm0, %v91_v0  ;;  %495 = vmatprep.subr.msk.mxu1 %vm107_vm0, %v95_v2  ;;  %v94_v4 = vld [vmem:[#allocation7 + $0x10] sm:$0xff]  ;;  %v93_v6 = vld [vmem:[#allocation7 + $0x8] sm:$0xff]  ;;  %v88_v7 = vld [vmem:[#allocation5] sm:$0xff]  ;;  %s412_s13 = sshll.u32 %s683_s12, 4  ;;  %p611_p7 = scmp.lt.s32.totalorder %s401_s11, %s401_s11  ;;  %s413_s13 = int_to_ptr.vmem [resolvable:$true] %s412_s13 }
  0x35   :  { %486 = vmatprep.subr.msk.mxu0 %vm107_vm0, %v90_v1  ;;  %496 = vmatpush3.xpose.msk.msra.mxu1 %vm107_vm0, %v95_v2  ;;  %v92_v8 = vld [vmem:[#allocation7] sm:$0xff]  ;;  %v99_v9 = vld [vmem:[#allocation8 + $0x18] sm:$0xff]  ;;  %v98_v11 = vld [vmem:[#allocation8 + $0x10] sm:$0xff] }
  0x36   :  { %492 = vmatprep.mubr.msk.f32.mxu0 %vm107_vm0, %v86_v3  ;;  %497 = vmatprep.subr.msk.mxu1 %vm107_vm0, %v94_v4  ;;  %v87_v10 = vld [vmem:[#allocation2 + $0x8] sm:$0xff]  ;;  %v97_v12 = vld [vmem:[#allocation8 + $0x8] sm:$0xff]  ;;  %v96_v13 = vld [vmem:[#allocation8] sm:$0xff] }
  0x37   :  { %503 = vmatprep.mubr.msk.f32.mxu1 %vm107_vm0, %v86_v3  ;;  %v445_v14 = vld [vmem:[%s826_s4] ss:$0 sm:$0xff]  ;;  %s606_s4 = scalar_lea.vmem %s401_s11, 256 }
  0x38   :  { %487 = vmatpush3.xpose.msk.msra.mxu0 %vm107_vm0, %v90_v1  ;;  %v452_v15 = vld [vmem:[%s827_s5] ss:$0 sm:$0xff]  ;;  %p607_p6 = scmp.ne.s32.totalorder %s401_s11, %s606_s4  ;;  %p612_p8 = scmp.lt.s32.totalorder %s606_s4, %s606_s4 }
  0x39   :  { %488 = vmatprep.subr.msk.mxu0 %vm107_vm0, %v89_v5  ;;  %498 = vmatpush3.xpose.msk.msra.mxu1 %vm107_vm0, %v94_v4 }
  0x3a   :  { %499 = vmatprep.subr.msk.mxu1 %vm107_vm0, %v93_v6  ;;  %p613_p9 = por %p612_p8, %p611_p7 }
  0x3c   :  { %489 = vmatpush3.xpose.msk.msra.mxu0 %vm107_vm0, %v89_v5  ;;  %p614_p10 = pnand %p613_p9, %p607_p6 }
  0x3d   :  { %490 = vmatprep.subr.msk.mxu0 %vm107_vm0, %v88_v7  ;;  %500 = vmatpush3.xpose.msk.msra.mxu1 %vm107_vm0, %v93_v6 }
  0x3e   :  { %501 = vmatprep.subr.msk.mxu1 %vm107_vm0, %v92_v8 }
  0x40   :  { %491 = vmatpush3.xpose.msk.msra.mxu0 %vm107_vm0, %v88_v7 }
  0x41   :  { %506 = vmatprep.subr.msk.mxu0 %vm107_vm0, %v99_v9  ;;  %502 = vmatpush3.xpose.msk.msra.mxu1 %vm107_vm0, %v92_v8 }
  0x43   :  { %493 = vmatmul.mubr.msk.f32.vlgmr.msra.gmra.mxu0 %vm107_vm0, %v87_v10 }
  0x44   :  { %507 = vmatpush3.xpose.msk.msra.mxu0 %vm107_vm0, %v99_v9  ;;  %504 = vmatmul.mubr.msk.f32.vlgmr.msra.gmra.mxu1 %vm107_vm0, %v87_v10 }
  0x45   :  { %508 = vmatprep.subr.msk.mxu0 %vm107_vm0, %v98_v11  ;;  %514 = vmatprep.mubr.msk.f32.mxu0 %vm107_vm0, %v86_v3 }
  0x48   :  { %509 = vmatpush3.xpose.msk.msra.mxu0 %vm107_vm0, %v98_v11 }
  0x49   :  { %510 = vmatprep.subr.msk.mxu0 %vm107_vm0, %v97_v12 }
  0x4c   :  { %511 = vmatpush3.xpose.msk.msra.mxu0 %vm107_vm0, %v97_v12 }
  0x4d   :  { %512 = vmatprep.subr.msk.mxu0 %vm107_vm0, %v96_v13 }
  0x50   :  { %513 = vmatpush3.xpose.msk.msra.mxu0 %vm107_vm0, %v96_v13 }
  0x53   :  { %515 = vmatmul.mubr.msk.f32.vlgmr.msra.gmra.mxu0 %vm107_vm0, %v87_v10 }
 0x103   :  { %v494_v16 = vpop.f32.mrf.mxu0 }
 0x104   :  { %v198_v17 = vadd.f32 %v494_v16, %v445_v14  ;;  %v505_v18 = vpop.f32.mrf.mxu1 }
 0x105   :  { %v192_v19 = vpop.f32.mrf.mxu0  ;;  %v294_v20 = vadd.f32 %v505_v18, %v452_v15 }
 0x106   :  { %202 = vst.msk [vmem:[#allocation10 + $0x8] sm:$0xff] %vm107_vm0, %v198_v17  ;;  %v193_v21 = vadd.f32 %v445_v14, %v192_v19  ;;  %v288_v22 = vpop.f32.mrf.mxu1 }
 0x107   :  { %298 = vst.msk [vmem:[#allocation11 + $0x8] sm:$0xff] %vm107_vm0, %v294_v20  ;;  %v289_v23 = vadd.f32 %v452_v15, %v288_v22 }
 0x108   :  { %201 = vst.msk [vmem:[#allocation10] sm:$0xff] %vm107_vm0, %v193_v21 }
 0x109   :  { %297 = vst.msk [vmem:[#allocation11] sm:$0xff] %vm107_vm0, %v289_v23 }
 0x10a   :  { %617 = shalt.err (!%p614_p10)
}
 0x10b   :  { %406 = dma.vmem_to_hbm [thread:$0]  %s401_s11, 256, %s829_s7, [#allocation4], %s678_s14, %s678_s14, %s679_s15  }
 0x10c   :  { %s626_s17 = scalar_lea.vmem %s413_s13, 256  ;;  %p631_p12 = scmp.lt.s32.totalorder %s413_s13, %s413_s13 }
 0x10d   :  { %p627_p11 = scmp.ne.s32.totalorder %s413_s13, %s626_s17  ;;  %p632_p13 = scmp.lt.s32.totalorder %s626_s17, %s626_s17 }
 0x10f   :  { %p633_p0 = por %p632_p13, %p631_p12 }
 0x111   :  { %p634_p1 = pnand %p633_p0, %p627_p11 }
 0x113   :  { %637 = shalt.err (!%p634_p1)
}
 0x114   :  { %418 = dma.vmem_to_hbm [thread:$0]  %s413_s13, 256, %s830_s8, [#allocation12], %s678_s14, %s678_s14, %s679_s15   ;;  %v516_v25 = vpop.f32.mrf.mxu0 }
 0x115   :  { %v459_v24 = vld [vmem:[%s828_s6] ss:$0 sm:$0xff]  ;;  %s684_s7 = smov [#allocation13]  }
 0x116   :  { %s424_s22 = sshll.u32 %s684_s7, 4  ;;  %v390_v26 = vadd.f32 %v516_v25, %v459_v24  ;;  %v384_v27 = vpop.f32.mrf.mxu0  ;;  %s425_s22 = int_to_ptr.vmem [resolvable:$true] %s424_s22 }
 0x117   :  { %v385_v28 = vadd.f32 %v459_v24, %v384_v27  ;;  %s646_s23 = scalar_lea.vmem %s425_s22, 256  ;;  %p651_p3 = scmp.lt.s32.totalorder %s425_s22, %s425_s22 }
 0x118   :  { %394 = vst.msk [vmem:[#allocation13 + $0x8] sm:$0xff] %vm107_vm0, %v390_v26  ;;  %p647_p2 = scmp.ne.s32.totalorder %s425_s22, %s646_s23  ;;  %p652_p4 = scmp.lt.s32.totalorder %s646_s23, %s646_s23 }
 0x119   :  { %393 = vst.msk [vmem:[#allocation13] sm:$0xff] %vm107_vm0, %v385_v28 }
 0x11a   :  { %p653_p5 = por %p652_p4, %p651_p3 }
 0x11c   :  { %p654_p6 = pnand %p653_p5, %p647_p2 }
 0x11e   :  { %657 = shalt.err (!%p654_p6)
}
 0x11f   :  { %430 = dma.vmem_to_hbm [thread:$0]  %s425_s22, 256, %s831_s9, [#allocation12], %s678_s14, %s678_s14, %s679_s15  }
 0x120   :  { %672 = dma.done.wait [#allocation4], 256  }
 0x121   :  { %673 = vsyncadd [#allocation4], 4294967040 }
 0x122   :  { %674 = dma.done.wait [#allocation12], 512  }
 0x123   :  { %675 = vsyncadd [#allocation12], 4294966784 }
 0x124   :  { %440 = vsyncpa [#allocation3], 1 }
 0x125   :  { %441 = vsyncpa [#allocation6], 1 }
 0x126   :  { %442 = vsyncpa [#allocation9], 1 }
 0x127   :  { %443 = vsyncpa [#allocation4], 1 }
 0x128   :  { %444 = vsyncpa [#allocation12], 1 }

</bundles_post_ra>
